<compile_context>
chip_gen: v6e
topology: v6e:2x2x1
jax: 0.10.0
libtpu: 0.0.40
codegen_flags: <defaults>
</compile_context>

<pallas_src>
import functools

import jax
import jax.numpy as jnp
from jax.experimental import pallas as pl
from jax.experimental.pallas import tpu as pltpu

_SUBLANE = 8
_LANE = 128
_DEFAULT_TILE_BYTES = 2 * 1024 * 1024  # ~2 MiB per input tile (x2 double-buffered)


def _min_value(dtype):
    dtype = jnp.dtype(dtype)
    if jnp.issubdtype(dtype, jnp.floating):
        return float("-inf")
    return int(jnp.iinfo(dtype).min)


def _round_down(x, m):
    return (x // m) * m


def _choose_tiles(R, S, itemsize, target_bytes):
    """Pick (tile_r, tile_s): ~target_bytes per tile, (8, 128)-aligned blocks."""
    # Spatial tile: keep the whole row when an 8-row slab fits the budget,
    # otherwise chop the spatial axis into lane-aligned chunks that are
    # max-accumulated across the trailing "arbitrary" grid axis.
    tile_s = max(_LANE,
                 _round_down(max(target_bytes // (_SUBLANE * itemsize), _LANE), _LANE))
    if tile_s >= S:
        tile_s = S  # block dim equals full array dim -> always legal

    # Row tile: fill the byte budget, multiple of 8 sublanes, never larger
    # than the array's row extent (so blocks never exceed the array).
    tile_r = max(_SUBLANE,
                 _round_down(max(target_bytes // (tile_s * itemsize), _SUBLANE), _SUBLANE))
    if R >= _SUBLANE:
        tile_r = min(tile_r, _round_down(R, _SUBLANE))
    else:
        tile_r = R  # block dim equals full array dim
    return tile_r, tile_s


def _mac_kernel(x_ref, o_ref, *, s_total, tile_s, spatial_steps, fill):
    """Running max of one (tile_r, tile_s) block into the resident output block."""
    x = x_ref[...]

    if s_total % tile_s != 0:
        # Ragged last spatial tile: out-of-bounds lanes hold unspecified data;
        # mask them with -inf / dtype-min so they can never win the max.
        col = (jax.lax.broadcasted_iota(jnp.int32, x.shape, 1)
               + pl.program_id(1) * tile_s)
        x = jnp.where(col < s_total, x, fill)

    part = jnp.max(x, axis=-1, keepdims=True)  # (tile_r, 1)

    if spatial_steps == 1:
        # Single spatial step: write the result directly, no accumulation.
        o_ref[...] = part.astype(o_ref.dtype)
    else:
        j = pl.program_id(1)

        @pl.when(j == 0)
        def _init():
            o_ref[...] = jnp.full(o_ref.shape, fill, o_ref.dtype)

        o_ref[...] = jnp.maximum(o_ref[...], part.astype(o_ref.dtype))


def mac(x: jax.Array, *, target_tile_bytes: int = _DEFAULT_TILE_BYTES) -> jax.Array:
    """Global spatial max pooling (MAC). x: (N, C, H, W) -> (N, C, 1, 1)."""
    N, C, H, W = x.shape
    R, S = N * C, H * W
    xf = x.reshape(R, S)
    itemsize = jnp.dtype(x.dtype).itemsize

    tile_r, tile_s = _choose_tiles(R, S, itemsize, target_tile_bytes)
    n_r = pl.cdiv(R, tile_r)
    n_s = pl.cdiv(S, tile_s)
    r_pad = n_r * tile_r  # padded row count: keeps every output write in-bounds

    kernel = functools.partial(
        _mac_kernel,
        s_total=S,
        tile_s=tile_s,
        spatial_steps=n_s,
        fill=_min_value(x.dtype),
    )

    out = pl.pallas_call(
        kernel,
        out_shape=jax.ShapeDtypeStruct((r_pad, 1), x.dtype),
        grid=(n_r, n_s),
        in_specs=[pl.BlockSpec((tile_r, tile_s), lambda i, j: (i, j))],
        out_specs=pl.BlockSpec((tile_r, 1), lambda i, j: (i, 0)),
        compiler_params=pltpu.CompilerParams(
            # Row tiles are independent -> "parallel" (megacore sharding on
            # v7x); spatial axis carries the running max -> "arbitrary", last.
            dimension_semantics=("parallel", "arbitrary"),
            # Explicit, modest VMEM budget: 2 x ~2 MiB double-buffered input
            # tiles + tiny output blocks fit comfortably on v5e/v6e/v7x.
            vmem_limit_bytes=32 * 1024 * 1024,
        ),
    )(xf)

    return out[:R, 0].reshape(N, C, 1, 1)


if __name__ == "__main__":
    key = jax.random.PRNGKey(0)

    # Primary check: the module's nominal small shape (single-tile fast path).
    x = jax.random.normal(key, (2, 4, 16, 16), dtype=jnp.float32)
    y = mac(x)
    jax.block_until_ready(y)
    ref = jnp.max(x, axis=(2, 3), keepdims=True)
    assert y.shape == (2, 4, 1, 1), y.shape
    assert jnp.allclose(y, ref), "mismatch vs reference (small shape)"

    # Secondary checks: exercise ragged row tiles, the spatial accumulator
    # axis, and the in-kernel lane mask by forcing tiny tiles.
    x2 = jax.random.normal(jax.random.PRNGKey(1), (2, 5, 24, 24), dtype=jnp.float32)
    ref2 = jnp.max(x2, axis=(2, 3), keepdims=True)

    y2a = mac(x2)  # default tiling: ragged rows, single spatial step
    jax.block_until_ready(y2a)
    assert y2a.shape == (2, 5, 1, 1), y2a.shape
    assert jnp.allclose(y2a, ref2), "mismatch vs reference (ragged rows)"

    y2b = mac(x2, target_tile_bytes=4096)  # forced spatial tiling + masking
    jax.block_until_ready(y2b)
    assert jnp.allclose(y2b, ref2), "mismatch vs reference (spatial accumulator)"

    print("KERNEL_OK")
</pallas_src>

<mosaic_0001>
module attributes {stable_mosaic.version = 11 : i64} {
  func.func @_mac_kernel(%arg0: i32, %arg1: i32, %arg2: memref<8x256xf32, #tpu.memory_space<vmem>>, %arg3: memref<8x1xf32, #tpu.memory_space<vmem>>) attributes {dimension_semantics = [#tpu.dimension_semantics<parallel>, #tpu.dimension_semantics<arbitrary>], iteration_bounds = array<i64: 1, 1>, scalar_prefetch = 0 : i64, scratch_operands = 0 : i64, tpu.core_type = #tpu.core_type<tc>, window_params = [{transform_indices = @transform_0, window_bounds = array<i64: 8, 256>}, {transform_indices = @transform_1, window_bounds = array<i64: 8, 1>}]} {
    %c0 = arith.constant 0 : index
    %c0_0 = arith.constant 0 : index
    %0 = vector.load %arg2[%c0, %c0_0] : memref<8x256xf32, #tpu.memory_space<vmem>>, vector<8x256xf32>
    %cst = arith.constant dense<0xFF800000> : vector<8xf32>
    %1 = vector.multi_reduction <maximumf>, %0, %cst [1] : vector<8x256xf32> to vector<8xf32>
    %2 = vector.shape_cast %1 : vector<8xf32> to vector<8x1xf32>
    %c0_1 = arith.constant 0 : index
    %c0_2 = arith.constant 0 : index
    %3 = vector.load %arg3[%c0_1, %c0_2] : memref<8x1xf32, #tpu.memory_space<vmem>>, vector<8x1xf32>
    tpu.vector_store %arg3[%c0_1, %c0_2], %2 {strides = array<i32>} : memref<8x1xf32, #tpu.memory_space<vmem>>, vector<8x1xf32>,
    return
  }
  func.func @transform_0(%arg0: i32, %arg1: i32) -> (i32, i32) {
    %c0_i32 = arith.constant 0 : i32
    return %arg0, %arg1 : i32, i32
  }
  func.func @transform_1(%arg0: i32, %arg1: i32) -> (i32, i32) {
    %c0_i32 = arith.constant 0 : i32
    %c0_i32_0 = arith.constant 0 : i32
    return %arg0, %c0_i32 : i32, i32
  }
}

</mosaic_0001>

<bundles_post_ra>
// kernel: tpu_custom_call.1
= control target key start
LH: loop header
LB: loop body
LE: loop exit
PB: predicated region body
PF: predicated region fallthrough
CT: control target
= control target key end

     0   :  { %6 = vsyncpa [#allocation3], 0  ;;  %s55_s6 = smov [#allocation2]   ;;  %s72_s0 = inlined_call_operand.hbm [shape: f32[8,256], index: 0, kind: input, shape index: {}]   ;;  %s73_s1 = inlined_call_operand.vmem [shape: f32[8,1], index: 1, kind: output, shape index: {}]  }
   0x1   :  { %s13_s7 = sshll.u32 %s55_s6, 4  ;;  %s14_s7 = int_to_ptr.vmem [resolvable:$true] %s13_s7 }
   0x2   :  { %s41_s8 = scalar_lea.vmem %s14_s7, 256  ;;  %p46_p1 = scmp.lt.s32.totalorder %s14_s7, %s14_s7 }
   0x3   :  { %p42_p0 = scmp.ne.s32.totalorder %s14_s7, %s41_s8  ;;  %p47_p2 = scmp.lt.s32.totalorder %s41_s8, %s41_s8 }
   0x5   :  { %p48_p3 = por %p47_p2, %p46_p1 }
   0x7   :  { %p49_p4 = pnand %p48_p3, %p42_p0 }
   0x9   :  { %52 = shalt.err (!%p49_p4)
}
   0xa   :  { %16 = dma.hbm_to_vmem [thread:$0]  %s72_s0, 256, %s14_s7, [#allocation3]  }
   0xb   :  { %53 = dma.done.wait [#allocation3], 256  }
   0xc   :  { %54 = vsyncadd [#allocation3], 4294967040  ;;  %v20_v0 = vld [vmem:[#allocation2] sm:$0xff]  ;;  %v21_v1 = vld [vmem:[#allocation2 + $0x8] sm:$0xff]  ;;  %vm25_vm0 = vcmask 7168  }
   0xd   :  { %v22_v2 = vmax.f32 %v20_v0, %v21_v1 }
   0xf   :  { %23 = vmax.xlane.f32.xlu0 %v22_v2 }
  0x98   :  { %v24_v3 = vpop.xlane.xlu0 %23 }
  0x99   :  { %26 = vst.msk [vmem:[%s73_s1] sm:$0xff] %vm25_vm0, %v24_v3 }
  0x9a   :  { %31 = vsyncpa [#allocation3], 1 }

</bundles_post_ra>
